<compile_context>
chip_gen: v7x
topology: tpu7x:2x2x1
jax: 0.10.0
libtpu: 0.0.40
codegen_flags: <defaults>
</compile_context>

<pallas_src>
import functools

import jax
import jax.numpy as jnp
import numpy as np
from jax import lax
from jax.experimental import pallas as pl
from jax.experimental.pallas import tpu as pltpu

LANE = 128


def _round_up(v, m):
    return (v + m - 1) // m * m


def convblock_kernel(x_ref, w1_ref, w2_ref, s1_ref, s2_ref, o_ref, mid_ref, *,
                     K, S, pad, conv1_packed,
                     L_out1_true, L_out1_comp, L_out2_true, L_out2_comp,
                     pool_size, pool_stride, L_pool):
    """One grid step processes Nb batch elements.

    x_ref  : packed   -> (Nb, L_out1_comp, 128)      host-side im2col of conv #1
             unpacked -> (Nb, L_in1,       Cin_p)    channels-last padded input
    w1_ref : packed   -> (128, Cout_p)               im2col weights (BN1 folded)
             unpacked -> (K, Cin_p, Cout_p)
    w2_ref : (K, Cout_p, Cout_p)                     per-tap weights (BN2 folded)
    s*_ref : (1, Cout_p)                             folded BatchNorm shifts (f32)
    o_ref  : (Nb, L_pool, Cout_p)                    pooled output (f32)
    mid_ref: (Nb, L_pad2, Cout_p)                    VMEM scratch (conv1 out / conv2 out)
    """
    Nb = o_ref.shape[0]
    Cout = o_ref.shape[-1]
    L_pad2 = mid_ref.shape[1]

    def window(ref, k, L_out):
        if S == 1:
            return ref[:, k:k + L_out, :]
        return ref[:, pl.ds(k, L_out, stride=S), :]   # strided conv (S > 1)

    # ---- Conv1d #1 (BN1 scale folded into weights) ----
    if conv1_packed:
        # K taps * C_in packed into one 128-lane group on the host -> one GEMM.
        acc1 = jnp.dot(x_ref[...].reshape(Nb * L_out1_comp, x_ref.shape[-1]),
                       w1_ref[...], preferred_element_type=jnp.float32)
    else:
        # K accumulated MXU pushes over shifted windows (no im2col copy).
        Cin = x_ref.shape[-1]
        acc1 = None
        for k in range(K):
            win = window(x_ref, k, L_out1_comp).reshape(Nb * L_out1_comp, Cin)
            part = jnp.dot(win, w1_ref[k], preferred_element_type=jnp.float32)
            acc1 = part if acc1 is None else acc1 + part

    # ---- BN1 shift + ReLU (f32) ----
    y1 = jnp.maximum(acc1 + s1_ref[...], 0.0).reshape(Nb, L_out1_comp, Cout)

    # Rows >= L_out1_true are length-padding artifacts; force them to zero so
    # they act as the right-hand zero halo of conv #2.
    if L_out1_comp != L_out1_true:
        row = lax.broadcasted_iota(jnp.int32, (Nb, L_out1_comp, Cout), 1)
        y1 = jnp.where(row < L_out1_true, y1, 0.0)

    # ---- Stage conv #1 output with zero halos (per step: megacore-safe) ----
    if pad > 0:
        mid_ref[:, 0:pad, :] = jnp.zeros((Nb, pad, Cout), mid_ref.dtype)
    tail = L_pad2 - (pad + L_out1_comp)
    if tail > 0:
        mid_ref[:, pad + L_out1_comp:L_pad2, :] = jnp.zeros(
            (Nb, tail, Cout), mid_ref.dtype)
    mid_ref[:, pad:pad + L_out1_comp, :] = y1.astype(mid_ref.dtype)

    # ---- Conv1d #2: K accumulated matmuls over shifted windows ----
    acc2 = None
    for k in range(K):
        win = window(mid_ref, k, L_out2_comp).reshape(Nb * L_out2_comp, Cout)
        part = jnp.dot(win, w2_ref[k], preferred_element_type=jnp.float32)
        acc2 = part if acc2 is None else acc2 + part

    # ---- BN2 shift + ReLU ----
    y2 = jnp.maximum(acc2 + s2_ref[...], 0.0).reshape(Nb, L_out2_comp, Cout)

    # ---- MaxPool1d via sublane-strided reads (no XLU relayout) ----
    # conv-1 contents of mid_ref are dead here; reuse rows [pad, pad+L_out2_comp)
    # as the pooling staging buffer (the zero halos are left untouched).
    mid_ref[:, pad:pad + L_out2_comp, :] = y2.astype(mid_ref.dtype)
    pooled = mid_ref[:, pl.ds(pad, L_pool, stride=pool_stride), :]
    for p in range(1, pool_size):
        pooled = jnp.maximum(
            pooled, mid_ref[:, pl.ds(pad + p, L_pool, stride=pool_stride), :])

    # TODO(synk): nn.Dropout is identity at inference; train-mode RNG masking
    #             (pltpu.prng_seed / prng_random_bits) is not implemented here.
    o_ref[...] = pooled.astype(o_ref.dtype)


def conv_block_forward(x, w1, w2, bn1, bn2, *, kernel_size, stride,
                       pool_size, pool_stride, compute_dtype=jnp.bfloat16):
    """x: (N, C_in, L) float32 (PyTorch NCL). Returns (N, C_out, L_pool) f32."""
    scale1, shift1 = bn1
    scale2, shift2 = bn2
    N, C_in, L = x.shape
    C_out = w1.shape[0]
    K, S = kernel_size, stride
    pad = K // 2

    dt_size = jnp.dtype(compute_dtype).itemsize
    granule = 8 * (4 // dt_size)              # sublane rows per tile: f32->8, bf16->16

    L_out1_true = (L + 2 * pad - K) // S + 1
    L_out1_comp = _round_up(L_out1_true, granule)
    L_out2_true = (L_out1_true + 2 * pad - K) // S + 1
    L_out2_comp = _round_up(L_out2_true, granule)
    L_pool = (L_out2_true - pool_size) // pool_stride + 1
    L_pad2 = max(L_out1_comp + 2 * pad, (L_out2_comp - 1) * S + K)

    Cin_p = _round_up(C_in, LANE)
    Cout_p = _round_up(C_out, LANE)
    conv1_packed = (K * C_in) <= LANE
    L_in1 = max(L + 2 * pad, (L_out1_comp - 1) * S + K)   # unpacked-path input rows

    # ---- generation-aware budget (v7x: 64 MiB/TC; v5e/v6e: 128 MiB) ----
    vmem_cap, num_cores = 64 << 20, 1
    try:
        info = pltpu.get_tpu_info()
        vmem_cap = int(getattr(info, "vmem_capacity_bytes", vmem_cap))
        for attr in ("num_cores", "tensorcores_per_chip", "num_tensorcores"):
            v = getattr(info, attr, None)
            if v:
                num_cores = int(v)
                break
    except Exception:
        pass
    budget = min(vmem_cap - (16 << 20), 96 << 20)

    if conv1_packed:
        in_rows, in_lanes = L_out1_comp, LANE
    else:
        in_rows, in_lanes = L_in1, Cin_p
    per_elem = (2 * in_rows * in_lanes * dt_size            # double-buffered input
                + L_pad2 * Cout_p * dt_size                 # mid scratch
                + 2 * L_pool * Cout_p * 4                   # double-buffered output
                + 4 * max(L_out1_comp * max(in_lanes, Cout_p),
                          L_out2_comp * Cout_p) * 4)        # live GEMM values
    w_bytes = (2 * ((LANE * Cout_p if conv1_packed else K * Cin_p * Cout_p)
                    + K * Cout_p * Cout_p) * dt_size
               + 2 * 2 * Cout_p * 4)

    Nb = int(max(1, min(N, 8, (budget - w_bytes) // max(1, per_elem))))
    if num_cores >= 2 and N >= 2 and -(-N // Nb) < 2:
        Nb = (N + 1) // 2                      # feed both TensorCores (v7x)
    N_pad = _round_up(N, Nb)

    need = Nb * per_elem + w_bytes + (2 << 20)
    vmem_limit = int(min(max(32 << 20, need + (8 << 20)), 60 << 20))

    # ---- host-side data prep ----
    x_t = jnp.transpose(x, (0, 2, 1)).astype(jnp.float32)   # (N, L, C_in)
    x_t = jnp.pad(x_t, ((0, N_pad - N), (pad, pad), (0, 0)))

    if conv1_packed:
        # host im2col: pack K taps * C_in into one 128-lane group.
        taps = [x_t[:, k:k + (L_out1_true - 1) * S + 1:S, :] for k in range(K)]
        x_in = jnp.concatenate(taps, axis=-1)                # (N_pad, L_out1_true, K*C_in)
        x_in = jnp.pad(x_in, ((0, 0), (0, L_out1_comp - L_out1_true),
                              (0, LANE - K * C_in))).astype(compute_dtype)
        in_block = (Nb, L_out1_comp, LANE)
    else:
        x_in = jnp.pad(x_t, ((0, 0), (0, L_in1 - (L + 2 * pad)),
                             (0, Cin_p - C_in))).astype(compute_dtype)
        in_block = (Nb, L_in1, Cin_p)

    def fold(w, scale):                                       # (Co,Ci,K)->(K,Ci,Co), BN scale folded
        return jnp.transpose(w.astype(jnp.float32) * scale[:, None, None], (2, 1, 0))

    w1f = fold(w1, scale1)
    w2f = fold(w2, scale2)
    if conv1_packed:
        w1_t = w1f.reshape(K * C_in, C_out)
        w1_t = jnp.pad(w1_t, ((0, LANE - K * C_in), (0, Cout_p - C_out)))
        w1_block, w1_map = (LANE, Cout_p), (lambda n: (0, 0))
    else:
        w1_t = jnp.pad(w1f, ((0, 0), (0, Cin_p - C_in), (0, Cout_p - C_out)))
        w1_block, w1_map = (K, Cin_p, Cout_p), (lambda n: (0, 0, 0))
    w1_t = w1_t.astype(compute_dtype)
    w2_t = jnp.pad(w2f, ((0, 0), (0, Cout_p - C_out), (0, Cout_p - C_out))
                   ).astype(compute_dtype)

    s1 = jnp.pad(shift1, (0, Cout_p - C_out)).reshape(1, Cout_p).astype(jnp.float32)
    s2 = jnp.pad(shift2, (0, Cout_p - C_out)).reshape(1, Cout_p).astype(jnp.float32)

    kern = functools.partial(
        convblock_kernel, K=K, S=S, pad=pad, conv1_packed=conv1_packed,
        L_out1_true=L_out1_true, L_out1_comp=L_out1_comp,
        L_out2_true=L_out2_true, L_out2_comp=L_out2_comp,
        pool_size=pool_size, pool_stride=pool_stride, L_pool=L_pool)

    out = pl.pallas_call(
        kern,
        out_shape=jax.ShapeDtypeStruct((N_pad, L_pool, Cout_p), jnp.float32),
        grid_spec=pltpu.PrefetchScalarGridSpec(
            num_scalar_prefetch=0,
            grid=(N_pad // Nb,),
            in_specs=[
                pl.BlockSpec(in_block, lambda n: (n, 0, 0)),
                pl.BlockSpec(w1_block, w1_map),
                pl.BlockSpec((K, Cout_p, Cout_p), lambda n: (0, 0, 0)),
                pl.BlockSpec((1, Cout_p), lambda n: (0, 0)),
                pl.BlockSpec((1, Cout_p), lambda n: (0, 0)),
            ],
            out_specs=pl.BlockSpec((Nb, L_pool, Cout_p), lambda n: (n, 0, 0)),
            scratch_shapes=[pltpu.VMEM((Nb, L_pad2, Cout_p), compute_dtype)],
        ),
        compiler_params=pltpu.CompilerParams(
            dimension_semantics=("parallel",),
            vmem_limit_bytes=vmem_limit),
    )(x_in, w1_t, w2_t, s1, s2)

    # drop batch/channel padding, back to PyTorch NCL layout
    return jnp.transpose(out[:N, :, :C_out], (0, 2, 1))


def _reference(x, w1, w2, bn1, bn2, *, stride, pad, pool_size, pool_stride,
               compute_dtype=jnp.float32):
    """Pure-JAX reference (inference-mode ConvBlock), same dtype pipeline."""
    scale1, shift1 = bn1
    scale2, shift2 = bn2
    cast = lambda a: a.astype(compute_dtype).astype(jnp.float32)
    dn = ('NCH', 'OIH', 'NCH')
    w1s = cast(w1 * scale1[:, None, None])
    w2s = cast(w2 * scale2[:, None, None])
    y = lax.conv_general_dilated(cast(x), w1s, (stride,), [(pad, pad)],
                                 dimension_numbers=dn)
    y = jnp.maximum(y + shift1[None, :, None], 0.0)
    y = lax.conv_general_dilated(cast(y), w2s, (stride,), [(pad, pad)],
                                 dimension_numbers=dn)
    y = jnp.maximum(y + shift2[None, :, None], 0.0)
    y = lax.reduce_window(y, -jnp.inf, lax.max,
                          (1, 1, pool_size), (1, 1, pool_stride), 'VALID')
    return y


if __name__ == "__main__":
    key = jax.random.PRNGKey(0)
    k1, k2, k3, k4, k5, k6, k7 = jax.random.split(key, 7)

    # Module hyper-params (activation = ReLU, dropout_p irrelevant at inference)
    N, C_in, C_out, L = 2, 4, 8, 16
    K, stride, pool_size, pool_stride = 3, 1, 2, 2
    eps = 1e-5

    # Deterministic synthetic parameters (no checkpoint loading).
    x = jax.random.normal(k1, (N, C_in, L), jnp.float32)
    w1 = 0.3 * jax.random.normal(k2, (C_out, C_in, K), jnp.float32)
    w2 = 0.3 * jax.random.normal(k3, (C_out, C_out, K), jnp.float32)

    # BatchNorm1d (inference): fold gamma/beta/running stats -> scale/shift
    g1 = 1.0 + 0.1 * jax.random.normal(k4, (C_out,), jnp.float32)
    b1 = 0.1 * jax.random.normal(k5, (C_out,), jnp.float32)
    m1 = jnp.linspace(-0.2, 0.2, C_out, dtype=jnp.float32)
    v1 = jnp.linspace(0.8, 1.2, C_out, dtype=jnp.float32)
    scale1 = g1 / jnp.sqrt(v1 + eps)
    shift1 = b1 - m1 * scale1

    g2 = 1.0 + 0.1 * jax.random.normal(k6, (C_out,), jnp.float32)
    b2 = 0.1 * jax.random.normal(k7, (C_out,), jnp.float32)
    m2 = jnp.linspace(0.1, -0.1, C_out, dtype=jnp.float32)
    v2 = jnp.linspace(1.2, 0.9, C_out, dtype=jnp.float32)
    scale2 = g2 / jnp.sqrt(v2 + eps)
    shift2 = b2 - m2 * scale2

    common = dict(kernel_size=K, stride=stride,
                  pool_size=pool_size, pool_stride=pool_stride)

    # float32 path: tight check against pure-JAX reference
    out_f32 = conv_block_forward(x, w1, w2, (scale1, shift1), (scale2, shift2),
                                 compute_dtype=jnp.float32, **common)
    out_f32 = jax.block_until_ready(out_f32)
    ref_f32 = _reference(x, w1, w2, (scale1, shift1), (scale2, shift2),
                         stride=stride, pad=K // 2, pool_size=pool_size,
                         pool_stride=pool_stride, compute_dtype=jnp.float32)
    np.testing.assert_allclose(np.asarray(out_f32), np.asarray(ref_f32),
                               rtol=1e-4, atol=1e-4)

    # bfloat16 path (MXU-native inputs, f32 accumulation): loose check
    out_bf16 = conv_block_forward(x, w1, w2, (scale1, shift1), (scale2, shift2),
                                  compute_dtype=jnp.bfloat16, **common)
    out_bf16 = jax.block_until_ready(out_bf16)
    ref_bf16 = _reference(x, w1, w2, (scale1, shift1), (scale2, shift2),
                          stride=stride, pad=K // 2, pool_size=pool_size,
                          pool_stride=pool_stride, compute_dtype=jnp.bfloat16)
    np.testing.assert_allclose(np.asarray(out_bf16), np.asarray(ref_bf16),
                               rtol=5e-2, atol=5e-2)

    print("KERNEL_OK")
</pallas_src>

<mosaic_0001>
module attributes {stable_mosaic.version = 11 : i64} {
  func.func @convblock_kernel(%arg0: i32, %arg1: memref<2x16x128xf32, #tpu.memory_space<vmem>>, %arg2: memref<128x128xf32, #tpu.memory_space<vmem>>, %arg3: memref<3x128x128xf32, #tpu.memory_space<vmem>>, %arg4: memref<1x128xf32, #tpu.memory_space<vmem>>, %arg5: memref<1x128xf32, #tpu.memory_space<vmem>>, %arg6: memref<2x8x128xf32, #tpu.memory_space<vmem>>, %arg7: memref<2x18x128xf32, #tpu.memory_space<vmem>>) attributes {dimension_semantics = [#tpu.dimension_semantics<parallel>], iteration_bounds = array<i64: 1>, scalar_prefetch = 0 : i64, scratch_operands = 1 : i64, tpu.core_type = #tpu.core_type<tc>, window_params = [{transform_indices = @transform_0, window_bounds = array<i64: 2, 16, 128>}, {pipeline_mode = #tpu.pipeline_mode<synchronous>, transform_indices = @transform_1, window_bounds = array<i64: 128, 128>}, {pipeline_mode = #tpu.pipeline_mode<synchronous>, transform_indices = @transform_2, window_bounds = array<i64: 3, 128, 128>}, {pipeline_mode = #tpu.pipeline_mode<synchronous>, transform_indices = @transform_3, window_bounds = array<i64: 1, 128>}, {pipeline_mode = #tpu.pipeline_mode<synchronous>, transform_indices = @transform_4, window_bounds = array<i64: 1, 128>}, {transform_indices = @transform_5, window_bounds = array<i64: 2, 8, 128>}]} {
    %c0 = arith.constant 0 : index
    %c0_0 = arith.constant 0 : index
    %c0_1 = arith.constant 0 : index
    %0 = vector.load %arg1[%c0, %c0_0, %c0_1] : memref<2x16x128xf32, #tpu.memory_space<vmem>>, vector<2x16x128xf32>
    %1 = vector.shape_cast %0 : vector<2x16x128xf32> to vector<32x128xf32>
    %c0_2 = arith.constant 0 : index
    %c0_3 = arith.constant 0 : index
    %2 = vector.load %arg2[%c0_2, %c0_3] : memref<128x128xf32, #tpu.memory_space<vmem>>, vector<128x128xf32>
    %cst = arith.constant dense<0.000000e+00> : vector<32x128xf32>
    %3 = tpu.matmul %1, %2, %cst {dimension_numbers = #tpu.dot_dimension_numbers<[1], [0], [0], [1], [0, 0, 1, 1], [], []>} : vector<32x128xf32>, vector<128x128xf32>, vector<32x128xf32> -> vector<32x128xf32>
    %c0_4 = arith.constant 0 : index
    %c0_5 = arith.constant 0 : index
    %4 = vector.load %arg4[%c0_4, %c0_5] : memref<1x128xf32, #tpu.memory_space<vmem>>, vector<1x128xf32>
    %5 = vector.broadcast %4 : vector<1x128xf32> to vector<32x128xf32>
    %6 = arith.addf %3, %5 : vector<32x128xf32>
    %cst_6 = arith.constant 0.000000e+00 : f32
    %7 = vector.broadcast %cst_6 : f32 to vector<32x128xf32>
    %8 = arith.maximumf %6, %7 : vector<32x128xf32>
    %9 = vector.shape_cast %8 : vector<32x128xf32> to vector<2x16x128xf32>
    %cst_7 = arith.constant 0.000000e+00 : f32
    %10 = vector.broadcast %cst_7 : f32 to vector<2x1x128xf32>
    %c0_8 = arith.constant 0 : index
    %c0_9 = arith.constant 0 : index
    %c0_10 = arith.constant 0 : index
    %11 = vector.load %arg7[%c0_8, %c0_9, %c0_10] : memref<2x18x128xf32, #tpu.memory_space<vmem>>, vector<2x1x128xf32>
    tpu.vector_store %arg7[%c0_8, %c0_9, %c0_10], %10 {strides = array<i32>} : memref<2x18x128xf32, #tpu.memory_space<vmem>>, vector<2x1x128xf32>,
    %cst_11 = arith.constant 0.000000e+00 : f32
    %12 = vector.broadcast %cst_11 : f32 to vector<2x1x128xf32>
    %c0_12 = arith.constant 0 : index
    %c17 = arith.constant 17 : index
    %c0_13 = arith.constant 0 : index
    %13 = vector.load %arg7[%c0_12, %c17, %c0_13] : memref<2x18x128xf32, #tpu.memory_space<vmem>>, vector<2x1x128xf32>
    tpu.vector_store %arg7[%c0_12, %c17, %c0_13], %12 {strides = array<i32>} : memref<2x18x128xf32, #tpu.memory_space<vmem>>, vector<2x1x128xf32>,
    %c0_14 = arith.constant 0 : index
    %c1 = arith.constant 1 : index
    %c0_15 = arith.constant 0 : index
    %14 = vector.load %arg7[%c0_14, %c1, %c0_15] : memref<2x18x128xf32, #tpu.memory_space<vmem>>, vector<2x16x128xf32>
    tpu.vector_store %arg7[%c0_14, %c1, %c0_15], %9 {strides = array<i32>} : memref<2x18x128xf32, #tpu.memory_space<vmem>>, vector<2x16x128xf32>,
    %c0_16 = arith.constant 0 : index
    %c0_17 = arith.constant 0 : index
    %c0_18 = arith.constant 0 : index
    %15 = vector.load %arg7[%c0_16, %c0_17, %c0_18] : memref<2x18x128xf32, #tpu.memory_space<vmem>>, vector<2x16x128xf32>
    %16 = vector.shape_cast %15 : vector<2x16x128xf32> to vector<32x128xf32>
    %c0_19 = arith.constant 0 : index
    %c0_20 = arith.constant 0 : index
    %c0_21 = arith.constant 0 : index
    %17 = vector.load %arg3[%c0_19, %c0_20, %c0_21] : memref<3x128x128xf32, #tpu.memory_space<vmem>>, vector<1x128x128xf32>
    %18 = vector.shape_cast %17 : vector<1x128x128xf32> to vector<128x128xf32>
    %cst_22 = arith.constant dense<0.000000e+00> : vector<32x128xf32>
    %19 = tpu.matmul %16, %18, %cst_22 {dimension_numbers = #tpu.dot_dimension_numbers<[1], [0], [0], [1], [0, 0, 1, 1], [], []>} : vector<32x128xf32>, vector<128x128xf32>, vector<32x128xf32> -> vector<32x128xf32>
    %c0_23 = arith.constant 0 : index
    %c1_24 = arith.constant 1 : index
    %c0_25 = arith.constant 0 : index
    %20 = vector.load %arg7[%c0_23, %c1_24, %c0_25] : memref<2x18x128xf32, #tpu.memory_space<vmem>>, vector<2x16x128xf32>
    %21 = vector.shape_cast %20 : vector<2x16x128xf32> to vector<32x128xf32>
    %c1_26 = arith.constant 1 : index
    %c0_27 = arith.constant 0 : index
    %c0_28 = arith.constant 0 : index
    %22 = vector.load %arg3[%c1_26, %c0_27, %c0_28] : memref<3x128x128xf32, #tpu.memory_space<vmem>>, vector<1x128x128xf32>
    %23 = vector.shape_cast %22 : vector<1x128x128xf32> to vector<128x128xf32>
    %cst_29 = arith.constant dense<0.000000e+00> : vector<32x128xf32>
    %24 = tpu.matmul %21, %23, %cst_29 {dimension_numbers = #tpu.dot_dimension_numbers<[1], [0], [0], [1], [0, 0, 1, 1], [], []>} : vector<32x128xf32>, vector<128x128xf32>, vector<32x128xf32> -> vector<32x128xf32>
    %25 = arith.addf %19, %24 : vector<32x128xf32>
    %c0_30 = arith.constant 0 : index
    %c2 = arith.constant 2 : index
    %c0_31 = arith.constant 0 : index
    %26 = vector.load %arg7[%c0_30, %c2, %c0_31] : memref<2x18x128xf32, #tpu.memory_space<vmem>>, vector<2x16x128xf32>
    %27 = vector.shape_cast %26 : vector<2x16x128xf32> to vector<32x128xf32>
    %c2_32 = arith.constant 2 : index
    %c0_33 = arith.constant 0 : index
    %c0_34 = arith.constant 0 : index
    %28 = vector.load %arg3[%c2_32, %c0_33, %c0_34] : memref<3x128x128xf32, #tpu.memory_space<vmem>>, vector<1x128x128xf32>
    %29 = vector.shape_cast %28 : vector<1x128x128xf32> to vector<128x128xf32>
    %cst_35 = arith.constant dense<0.000000e+00> : vector<32x128xf32>
    %30 = tpu.matmul %27, %29, %cst_35 {dimension_numbers = #tpu.dot_dimension_numbers<[1], [0], [0], [1], [0, 0, 1, 1], [], []>} : vector<32x128xf32>, vector<128x128xf32>, vector<32x128xf32> -> vector<32x128xf32>
    %31 = arith.addf %25, %30 : vector<32x128xf32>
    %c0_36 = arith.constant 0 : index
    %c0_37 = arith.constant 0 : index
    %32 = vector.load %arg5[%c0_36, %c0_37] : memref<1x128xf32, #tpu.memory_space<vmem>>, vector<1x128xf32>
    %33 = vector.broadcast %32 : vector<1x128xf32> to vector<32x128xf32>
    %34 = arith.addf %31, %33 : vector<32x128xf32>
    %cst_38 = arith.constant 0.000000e+00 : f32
    %35 = vector.broadcast %cst_38 : f32 to vector<32x128xf32>
    %36 = arith.maximumf %34, %35 : vector<32x128xf32>
    %37 = vector.shape_cast %36 : vector<32x128xf32> to vector<2x16x128xf32>
    %c0_39 = arith.constant 0 : index
    %c1_40 = arith.constant 1 : index
    %c0_41 = arith.constant 0 : index
    %38 = vector.load %arg7[%c0_39, %c1_40, %c0_41] : memref<2x18x128xf32, #tpu.memory_space<vmem>>, vector<2x16x128xf32>
    tpu.vector_store %arg7[%c0_39, %c1_40, %c0_41], %37 {strides = array<i32>} : memref<2x18x128xf32, #tpu.memory_space<vmem>>, vector<2x16x128xf32>,
    %c0_42 = arith.constant 0 : index
    %c1_43 = arith.constant 1 : index
    %c0_44 = arith.constant 0 : index
    %39 = tpu.strided_load %arg7[%c0_42, %c1_43, %c0_44] {strides = array<i32: 1, 2, 1>} : memref<2x18x128xf32, #tpu.memory_space<vmem>>, vector<2x8x128xf32>
    %c0_45 = arith.constant 0 : index
    %c2_46 = arith.constant 2 : index
    %c0_47 = arith.constant 0 : index
    %40 = tpu.strided_load %arg7[%c0_45, %c2_46, %c0_47] {strides = array<i32: 1, 2, 1>} : memref<2x18x128xf32, #tpu.memory_space<vmem>>, vector<2x8x128xf32>
    %41 = arith.maximumf %39, %40 : vector<2x8x128xf32>
    %c0_48 = arith.constant 0 : index
    %c0_49 = arith.constant 0 : index
    %c0_50 = arith.constant 0 : index
    %42 = vector.load %arg6[%c0_48, %c0_49, %c0_50] : memref<2x8x128xf32, #tpu.memory_space<vmem>>, vector<2x8x128xf32>
    tpu.vector_store %arg6[%c0_48, %c0_49, %c0_50], %41 {strides = array<i32>} : memref<2x8x128xf32, #tpu.memory_space<vmem>>, vector<2x8x128xf32>,
    return
  }
  func.func @transform_0(%arg0: i32) -> (i32, i32, i32) {
    %c0_i32 = arith.constant 0 : i32
    %c0_i32_0 = arith.constant 0 : i32
    %c0_i32_1 = arith.constant 0 : i32
    return %arg0, %c0_i32, %c0_i32_0 : i32, i32, i32
  }
  func.func @transform_1(%arg0: i32) -> (i32, i32) {
    %c0_i32 = arith.constant 0 : i32
    %c0_i32_0 = arith.constant 0 : i32
    %c0_i32_1 = arith.constant 0 : i32
    return %c0_i32, %c0_i32_0 : i32, i32
  }
  func.func @transform_2(%arg0: i32) -> (i32, i32, i32) {
    %c0_i32 = arith.constant 0 : i32
    %c0_i32_0 = arith.constant 0 : i32
    %c0_i32_1 = arith.constant 0 : i32
    %c0_i32_2 = arith.constant 0 : i32
    return %c0_i32, %c0_i32_0, %c0_i32_1 : i32, i32, i32
  }
  func.func @transform_3(%arg0: i32) -> (i32, i32) {
    %c0_i32 = arith.constant 0 : i32
    %c0_i32_0 = arith.constant 0 : i32
    %c0_i32_1 = arith.constant 0 : i32
    return %c0_i32, %c0_i32_0 : i32, i32
  }
  func.func @transform_4(%arg0: i32) -> (i32, i32) {
    %c0_i32 = arith.constant 0 : i32
    %c0_i32_0 = arith.constant 0 : i32
    %c0_i32_1 = arith.constant 0 : i32
    return %c0_i32, %c0_i32_0 : i32, i32
  }
  func.func @transform_5(%arg0: i32) -> (i32, i32, i32) {
    %c0_i32 = arith.constant 0 : i32
    %c0_i32_0 = arith.constant 0 : i32
    %c0_i32_1 = arith.constant 0 : i32
    return %arg0, %c0_i32, %c0_i32_0 : i32, i32, i32
  }
}

</mosaic_0001>

<bundles_post_ra>
// kernel: tpu_custom_call.1
= control target key start
LH: loop header
LB: loop body
LE: loop exit
PB: predicated region body
PF: predicated region fallthrough
CT: control target
= control target key end

     0   :  { %10 = vsyncpa [#allocation4], 0  ;;  %s1137_s0 = inlined_call_operand.hbm [shape: f32[2,16,128], index: 0, kind: input, shape index: {}]   ;;  %s1138_s1 = inlined_call_operand.hbm [shape: f32[128,128], index: 1, kind: input, shape index: {}]   ;;  %s1139_s2 = inlined_call_operand.hbm [shape: f32[3,128,128], index: 2, kind: input, shape index: {}]   ;;  %s1140_s3 = inlined_call_operand.vmem [shape: f32[1,128], index: 3, kind: input, shape index: {}]   ;;  %s1141_s4 = inlined_call_operand.vmem [shape: f32[1,128], index: 4, kind: input, shape index: {}]   ;;  %s1142_s5 = inlined_call_operand.hbm [shape: f32[2,8,128], index: 5, kind: output, shape index: {}]  }
   0x1   :  { %11 = vsyncpa [#allocation7], 0 }
   0x2   :  { %12 = vsyncpa [#allocation5], 0  ;;  %s1027_s18 = smov [#allocation6]   ;;  %s1028_s20 = smov [#allocation3]  }
   0x3   :  { %s30_s19 = sshll.u32 %s1027_s18, 4  ;;  %s18_s21 = sshll.u32 %s1028_s20, 4  ;;  %s31_s19 = int_to_ptr.vmem [resolvable:$true] %s30_s19  ;;  %s1064_s21 = int_to_ptr.vmem [resolvable:$true] %s18_s21 }
   0x4   :  { %s933_s24 = scalar_lea.hbm %s1138_s1, 2048 }
   0x5   :  { %p934_p0 = scmp.ne.s32.totalorder %s1138_s1, %s933_s24  ;;  %p937_p1 = scmp.lt.u32.totalorder %s933_s24, %s1138_s1 }
   0x7   :  { %p939_p2 = pnand %p937_p1, %p934_p0 }
   0x9   :  { %942 = shalt.err (!%p939_p2)
}
   0xa   :  { %s943_s29 = scalar_lea.vmem %s31_s19, 2048  ;;  %p948_p4 = scmp.lt.s32.totalorder %s31_s19, %s31_s19 }
   0xb   :  { %p944_p3 = scmp.ne.s32.totalorder %s31_s19, %s943_s29  ;;  %p949_p5 = scmp.lt.s32.totalorder %s943_s29, %s943_s29 }
   0xd   :  { %p950_p6 = por %p949_p5, %p948_p4 }
   0xf   :  { %p951_p7 = pnand %p950_p6, %p944_p3 }
  0x11   :  { %954 = shalt.err (!%p951_p7)
}
  0x12   :  { %s1029_s30 = smov 128   ;;  %s1030_s6 = smov 8  }
  0x13   :  { %36 = dma.hbm_to_vmem [thread:$0]  %s1138_s1, 2048, %s31_s19, [#allocation7], %s1029_s30, %s1029_s30, %s1030_s6  }
  0x14   :  { %s955_s11 = scalar_lea.hbm %s1137_s0, 512 }
  0x15   :  { %p956_p8 = scmp.ne.s32.totalorder %s1137_s0, %s955_s11  ;;  %p959_p9 = scmp.lt.u32.totalorder %s955_s11, %s1137_s0 }
  0x17   :  { %p961_p10 = pnand %p959_p9, %p956_p8 }
  0x19   :  { %964 = shalt.err (!%p961_p10)
}
  0x1a   :  { %s965_s16 = scalar_lea.vmem %s1064_s21, 512  ;;  %p970_p12 = scmp.lt.s32.totalorder %s1064_s21, %s1064_s21 }
  0x1b   :  { %p966_p11 = scmp.ne.s32.totalorder %s1064_s21, %s965_s16  ;;  %p971_p13 = scmp.lt.s32.totalorder %s965_s16, %s965_s16 }
  0x1d   :  { %p972_p0 = por %p971_p13, %p970_p12 }
  0x1f   :  { %p973_p1 = pnand %p972_p0, %p966_p11 }
  0x21   :  { %976 = shalt.err (!%p973_p1)
}
  0x22   :  { %24 = dma.hbm_to_vmem [thread:$0]  %s1137_s0, 512, %s1064_s21, [#allocation4], %s1029_s30, %s1029_s30, %s1030_s6  }
  0x23   :  { %s1031_s18 = smov [#allocation8]   ;;  %s977_s23 = scalar_lea.hbm %s1139_s2, 6144 }
  0x24   :  { %s42_s19 = sshll.u32 %s1031_s18, 4  ;;  %p978_p2 = scmp.ne.s32.totalorder %s1139_s2, %s977_s23  ;;  %s43_s19 = int_to_ptr.vmem [resolvable:$true] %s42_s19 }
  0x25   :  { %p981_p3 = scmp.lt.u32.totalorder %s977_s23, %s1139_s2 }
  0x27   :  { %p983_p4 = pnand %p981_p3, %p978_p2 }
  0x29   :  { %986 = shalt.err (!%p983_p4)
}
  0x2a   :  { %s987_s28 = scalar_lea.vmem %s43_s19, 6144  ;;  %p992_p6 = scmp.lt.s32.totalorder %s43_s19, %s43_s19 }
  0x2b   :  { %p988_p5 = scmp.ne.s32.totalorder %s43_s19, %s987_s28  ;;  %p993_p7 = scmp.lt.s32.totalorder %s987_s28, %s987_s28 }
  0x2d   :  { %p994_p8 = por %p993_p7, %p992_p6 }
  0x2f   :  { %p995_p9 = pnand %p994_p8, %p988_p5 }
  0x31   :  { %998 = shalt.err (!%p995_p9)
}
  0x32   :  { %48 = dma.hbm_to_vmem [thread:$0]  %s1139_s2, 6144, %s43_s19, [#allocation7], %s1029_s30, %s1029_s30, %s1030_s6  }
  0x33   :  { %1021 = dma.done.wait [#allocation4], 512  }
  0x34   :  { %1022 = vsyncadd [#allocation4], 4294966784 }
  0x35   :  { %1023 = dma.done.wait [#allocation7], 8192  }
  0x36   :  { %1024 = vsyncadd [#allocation7], 4294959104  ;;  %v66_v0 = vld [vmem:[#allocation6] sm:$0xff]  ;;  %v67_v1 = vld [vmem:[#allocation6 + $0x8] sm:$0xff] }
  0x37   :  { %v68_v2 = vld [vmem:[#allocation6 + $0x10] sm:$0xff]  ;;  %v790_v3 = vpack.c.bf16 %v67_v1, %v66_v0  ;;  %v69_v4 = vld [vmem:[#allocation6 + $0x18] sm:$0xff]  ;;  %v70_v6 = vld [vmem:[#allocation6 + $0x20] sm:$0xff] }
  0x38   :  { %v794_v5 = vpack.c.bf16 %v69_v4, %v68_v2  ;;  %v71_v7 = vld [vmem:[#allocation6 + $0x28] sm:$0xff]  ;;  %v62_v9 = vld [vmem:[#allocation3] sm:$0xff]  ;;  %v72_v10 = vld [vmem:[#allocation6 + $0x30] sm:$0xff] }
  0x39   :  { %791 = vmatprep.subr.bf16.mxu0 %v790_v3  ;;  %v798_v8 = vpack.c.bf16 %v71_v7, %v70_v6  ;;  %v73_v11 = vld [vmem:[#allocation6 + $0x38] sm:$0xff]  ;;  %670 = vmatprep.mubr.f32.mxu0 %v62_v9  ;;  %v190_v12 = vld [vmem:[#allocation8] sm:$0xff]  ;;  %v191_v13 = vld [vmem:[#allocation8 + $0x8] sm:$0xff]  ;;  %v1032_v9 = vmov 0.0  }
  0x3a   :  { %793 = vmatpush3.bf16.msra.mxu0 %v790_v3  ;;  %v854_v14 = vpack.c.bf16 %v191_v13, %v190_v12  ;;  %v192_v15 = vld [vmem:[#allocation8 + $0x10] sm:$0xff]  ;;  %v193_v16 = vld [vmem:[#allocation8 + $0x18] sm:$0xff]  ;;  %v802_v17 = vpack.c.bf16 %v73_v11, %v72_v10  ;;  %v194_v19 = vld [vmem:[#allocation8 + $0x20] sm:$0xff]  ;;  %178 = vst [vmem:[#allocation2] sm:$0x1] %v1032_v9 }
  0x3b   :  { %795 = vmatprep.subr.bf16.mxu0 %v794_v5  ;;  %v858_v18 = vpack.c.bf16 %v193_v16, %v192_v15  ;;  %v195_v20 = vld [vmem:[#allocation8 + $0x28] sm:$0xff]  ;;  %v74_v21 = vld [vmem:[#allocation6 + $0x40] sm:$0xff]  ;;  %v196_v25 = vld [vmem:[#allocation8 + $0x30] sm:$0xff]  ;;  %179 = vst [vmem:[#allocation2 + $0x18] sm:$0x1] %v1032_v9 }
  0x3c   :  { %v75_v22 = vld [vmem:[#allocation6 + $0x48] sm:$0xff]  ;;  %855 = vmatprep.subr.bf16.mxu1 %v854_v14  ;;  %v862_v23 = vpack.c.bf16 %v195_v20, %v194_v19  ;;  %v197_v26 = vld [vmem:[#allocation8 + $0x38] sm:$0xff]  ;;  %v76_v27 = vld [vmem:[#allocation6 + $0x50] sm:$0xff]  ;;  %180 = vst [vmem:[#allocation2 + $0x11] sm:$0x1] %v1032_v9 }
  0x3d   :  { %857 = vmatpush3.bf16.msra.mxu1 %v854_v14  ;;  %v806_v24 = vpack.c.bf16 %v75_v22, %v74_v21  ;;  %v77_v28 = vld [vmem:[#allocation6 + $0x58] sm:$0xff]  ;;  %v866_v29 = vpack.c.bf16 %v197_v26, %v196_v25  ;;  %v198_v31 = vld [vmem:[#allocation8 + $0x40] sm:$0xff]  ;;  %v199_v32 = vld [vmem:[#allocation8 + $0x48] sm:$0xff]  ;;  %181 = vst [vmem:[#allocation2 + $0x29] sm:$0x1] %v1032_v9 }
  0x3e   :  { %797 = vmatpush3.bf16.msra.mxu0 %v794_v5  ;;  %859 = vmatprep.subr.bf16.mxu1 %v858_v18  ;;  %v810_v30 = vpack.c.bf16 %v77_v28, %v76_v27  ;;  %v78_v33 = vld [vmem:[#allocation6 + $0x60] sm:$0xff]  ;;  %v79_v34 = vld [vmem:[#allocation6 + $0x68] sm:$0xff]  ;;  %v870_v35 = vpack.c.bf16 %v199_v32, %v198_v31  ;;  %v80_v37 = vld [vmem:[#allocation6 + $0x70] sm:$0xff] }
  0x3f   :  { %799 = vmatprep.subr.bf16.mxu0 %v798_v8  ;;  %v814_v36 = vpack.c.bf16 %v79_v34, %v78_v33  ;;  %v81_v38 = vld [vmem:[#allocation6 + $0x78] sm:$0xff]  ;;  %v211_v40 = vld [vmem:[#allocation8 + $0x80] sm:$0xff]  ;;  %v212_v41 = vld [vmem:[#allocation8 + $0x88] sm:$0xff] }
  0x40   :  { %v818_v39 = vpack.c.bf16 %v81_v38, %v80_v37  ;;  %v822_v42 = vpack.c.bf16 %v212_v41, %v211_v40  ;;  %v213_v43 = vld [vmem:[#allocation8 + $0x90] sm:$0xff]  ;;  %v214_v44 = vld [vmem:[#allocation8 + $0x98] sm:$0xff]  ;;  %v63_v45 = vld [vmem:[#allocation3 + $0x8] sm:$0xff] }
  0x41   :  { %861 = vmatpush3.bf16.msra.mxu1 %v858_v18  ;;  %v64_v46 = vld [vmem:[#allocation3 + $0x10] sm:$0xff]  ;;  %v826_v47 = vpack.c.bf16 %v214_v44, %v213_v43  ;;  %v215_v48 = vld [vmem:[#allocation8 + $0xa0] sm:$0xff]  ;;  %v216_v49 = vld [vmem:[#allocation8 + $0xa8] sm:$0xff] }
  0x42   :  { %801 = vmatpush3.bf16.msra.mxu0 %v798_v8  ;;  %863 = vmatprep.subr.bf16.mxu1 %v862_v23  ;;  %v65_v50 = vld [vmem:[#allocation3 + $0x18] sm:$0xff]  ;;  %v830_v51 = vpack.c.bf16 %v216_v49, %v215_v48  ;;  %v217_v52 = vld [vmem:[#allocation8 + $0xb0] sm:$0xff]  ;;  %v219_v55 = vld [vmem:[#allocation8 + $0xc0] sm:$0xff] }
  0x43   :  { %803 = vmatprep.subr.bf16.mxu0 %v802_v17  ;;  %v218_v53 = vld [vmem:[#allocation8 + $0xb8] sm:$0xff]  ;;  %v220_v56 = vld [vmem:[#allocation8 + $0xc8] sm:$0xff]  ;;  %v221_v58 = vld [vmem:[#allocation8 + $0xd0] sm:$0xff] }
  0x44   :  { %v834_v54 = vpack.c.bf16 %v218_v53, %v217_v52  ;;  %v838_v57 = vpack.c.bf16 %v220_v56, %v219_v55  ;;  %v222_v59 = vld [vmem:[#allocation8 + $0xd8] sm:$0xff]  ;;  %v223_v61 = vld [vmem:[#allocation8 + $0xe0] sm:$0xff]  ;;  %v224_v62 = vld [vmem:[#allocation8 + $0xe8] sm:$0xff] }
  0x45   :  { %865 = vmatpush3.bf16.msra.mxu1 %v862_v23  ;;  %v842_v60 = vpack.c.bf16 %v222_v59, %v221_v58  ;;  %v846_v63 = vpack.c.bf16 %v224_v62, %v223_v61  ;;  %v200_v0 = vld [vmem:[#allocation8 + $0x50] sm:$0xff]  ;;  %v201_v1 = vld [vmem:[#allocation8 + $0x58] sm:$0xff]  ;;  %v202_v6 = vld [vmem:[#allocation8 + $0x60] sm:$0xff] }
  0x46   :  { %805 = vmatpush3.bf16.msra.mxu0 %v802_v17  ;;  %867 = vmatprep.subr.bf16.mxu1 %v866_v29  ;;  %v874_v2 = vpack.c.bf16 %v201_v1, %v200_v0  ;;  %v225_v3 = vld [vmem:[#allocation8 + $0xf0] sm:$0xff]  ;;  %v226_v4 = vld [vmem:[#allocation8 + $0xf8] sm:$0xff]  ;;  %v203_v7 = vld [vmem:[#allocation8 + $0x68] sm:$0xff] }
  0x47   :  { %807 = vmatprep.subr.bf16.mxu0 %v806_v24  ;;  %v850_v5 = vpack.c.bf16 %v226_v4, %v225_v3  ;;  %v878_v8 = vpack.c.bf16 %v203_v7, %v202_v6  ;;  %v204_v10 = vld [vmem:[#allocation8 + $0x70] sm:$0xff]  ;;  %v205_v11 = vld [vmem:[#allocation8 + $0x78] sm:$0xff]  ;;  %v402_v13 = vld [vmem:[#allocation8 + $0x100] sm:$0xff] }
  0x48   :  { %v882_v12 = vpack.c.bf16 %v205_v11, %v204_v10  ;;  %v403_v14 = vld [vmem:[#allocation8 + $0x108] sm:$0xff]  ;;  %v556_v16 = vld [vmem:[%s1140_s3] ss:$0 sm:$0xff]  ;;  %v406_v34 = vld [vmem:[#allocation8 + $0x120] sm:$0xff] }
  0x49   :  { %869 = vmatpush3.bf16.msra.mxu1 %v866_v29  ;;  %v886_v15 = vpack.c.bf16 %v403_v14, %v402_v13  ;;  %v404_v29 = vld [vmem:[#allocation8 + $0x110] sm:$0xff]  ;;  %v409_v40 = vld [vmem:[#allocation8 + $0x138] sm:$0xff]  ;;  %v410_v43 = vld [vmem:[#allocation8 + $0x140] sm:$0xff] }
  0x4a   :  { %809 = vmatpush3.bf16.msra.mxu0 %v806_v24  ;;  %871 = vmatprep.subr.bf16.mxu1 %v870_v35  ;;  %v411_v44 = vld [vmem:[#allocation8 + $0x148] sm:$0xff]  ;;  %v414_v49 = vld [vmem:[#allocation8 + $0x160] sm:$0xff]  ;;  %v416_v52 = vld [vmem:[#allocation8 + $0x170] sm:$0xff] }
  0x4b   :  { %811 = vmatprep.subr.bf16.mxu0 %v810_v30  ;;  %v417_v53 = vld [vmem:[#allocation8 + $0x178] sm:$0xff] }
  0x4d   :  { %873 = vmatpush3.bf16.msra.mxu1 %v870_v35  ;;  %v407_v35 = vld [vmem:[#allocation8 + $0x128] sm:$0xff] }
  0x4e   :  { %813 = vmatpush3.bf16.msra.mxu0 %v810_v30  ;;  %875 = vmatprep.subr.bf16.mxu1 %v874_v2  ;;  %v405_v30 = vld [vmem:[#allocation8 + $0x118] sm:$0xff]  ;;  %v894_v38 = vpack.c.bf16 %v407_v35, %v406_v34 }
  0x4f   :  { %815 = vmatprep.subr.bf16.mxu0 %v814_v36  ;;  %v890_v33 = vpack.c.bf16 %v405_v30, %v404_v29 }
  0x51   :  { %877 = vmatpush3.bf16.msra.mxu1 %v874_v2 }
  0x52   :  { %817 = vmatpush3.bf16.msra.mxu0 %v814_v36  ;;  %879 = vmatprep.subr.bf16.mxu1 %v878_v8 }
  0x53   :  { %819 = vmatprep.subr.bf16.mxu0 %v818_v39 }
  0x55   :  { %881 = vmatpush3.bf16.msra.mxu1 %v878_v8 }
  0x56   :  { %821 = vmatpush3.bf16.msra.mxu0 %v818_v39  ;;  %883 = vmatprep.subr.bf16.mxu1 %v882_v12  ;;  %v408_v39 = vld [vmem:[#allocation8 + $0x130] sm:$0xff] }
  0x57   :  { %823 = vmatprep.subr.bf16.mxu0 %v822_v42 }
  0x59   :  { %671 = vmatmul.mubr.f32.vlgmr.msra.gmra.mrb[0].mxu0 %v63_v45  ;;  %885 = vmatpush3.bf16.msra.mxu1 %v882_v12  ;;  %v902_v45 = vpack.c.bf16 %v411_v44, %v410_v43 }
  0x5a   :  { %673 = vmatprep.mubr.f32.mxu0 %v64_v46  ;;  %825 = vmatpush3.bf16.msra.mxu0 %v822_v42  ;;  %v898_v42 = vpack.c.bf16 %v409_v40, %v408_v39  ;;  %v412_v46 = vld [vmem:[#allocation8 + $0x150] sm:$0xff] }
  0x5b   :  { %827 = vmatprep.subr.bf16.mxu0 %v826_v47  ;;  %887 = vmatprep.subr.bf16.mxu1 %v886_v15 }
  0x5d   :  { %674 = vmatmul.mubr.f32.gmra.mrb[2].mxu0 %v65_v50  ;;  %v415_v50 = vld [vmem:[#allocation8 + $0x168] sm:$0xff] }
  0x5e   :  { %829 = vmatpush3.bf16.msra.mxu0 %v826_v47  ;;  %v413_v47 = vld [vmem:[#allocation8 + $0x158] sm:$0xff] }
  0x5f   :  { %831 = vmatprep.subr.bf16.mxu0 %v830_v51  ;;  %v906_v48 = vpack.c.bf16 %v413_v47, %v412_v46 }
  0x62   :  { %833 = vmatpush3.bf16.msra.mxu0 %v830_v51  ;;  %v910_v51 = vpack.c.bf16 %v415_v50, %v414_v49 }
  0x63   :  { %835 = vmatprep.subr.bf16.mxu0 %v834_v54 }
  0x66   :  { %837 = vmatpush3.bf16.msra.mxu0 %v834_v54  ;;  %v914_v54 = vpack.c.bf16 %v417_v53, %v416_v52 }
  0x67   :  { %839 = vmatprep.subr.bf16.mxu0 %v838_v57 }
  0x6a   :  { %841 = vmatpush3.bf16.msra.mxu0 %v838_v57 }
  0x6b   :  { %843 = vmatprep.subr.bf16.mxu0 %v842_v60 }
  0x6e   :  { %845 = vmatpush3.bf16.msra.mxu0 %v842_v60 }
  0x6f   :  { %847 = vmatprep.subr.bf16.mxu0 %v846_v63 }
  0x72   :  { %849 = vmatpush3.bf16.msra.mxu0 %v846_v63  ;;  %v557_v63 = vld [vmem:[%s1141_s4] ss:$0 sm:$0xff]  ;;  %s1033_s4 = smov [#allocation9]  }
  0x73   :  { %851 = vmatprep.subr.bf16.mxu0 %v850_v5  ;;  %s543_s8 = sshll.u32 %s1033_s4, 4  ;;  %s544_s8 = int_to_ptr.vmem [resolvable:$true] %s543_s8 }
  0x74   :  { %s999_s9 = scalar_lea.vmem %s544_s8, 256  ;;  %p1004_p11 = scmp.lt.s32.totalorder %s544_s8, %s544_s8 }
  0x75   :  { %p1000_p10 = scmp.ne.s32.totalorder %s544_s8, %s999_s9  ;;  %p1005_p12 = scmp.lt.s32.totalorder %s999_s9, %s999_s9 }
  0x76   :  { %853 = vmatpush3.bf16.msra.mxu0 %v850_v5 }
  0x77   :  { %p1006_p13 = por %p1005_p12, %p1004_p11 }
  0x79   :  { %p1007_p0 = pnand %p1006_p13, %p1000_p10 }
 0x12c   :  { %v672_v17 = vpop.f32.mrb[0].mxu0 }
 0x12d   :  { %v161_v18 = vadd.f32 %v672_v17, %v556_v16  ;;  %v155_v19 = vpop.f32.mrb[1].mxu0 }
 0x12e   :  { %v156_v20 = vadd.f32 %v556_v16, %v155_v19 }
 0x12f   :  { %v175_v21 = vmax.f32 %v161_v18, 0.0 }
 0x130   :  { %v174_v22 = vmax.f32 %v156_v20, 0.0  ;;  %v675_v23 = vpop.f32.mrb[2].mxu0 }
 0x131   :  { %183 = vst [vmem:[#allocation2 + $0x9] sm:$0xff] %v175_v21  ;;  %v171_v24 = vadd.f32 %v675_v23, %v556_v16  ;;  %v165_v25 = vpop.f32.mrb[3].mxu0 }
 0x132   :  { %182 = vst [vmem:[#allocation2 + $0x1] sm:$0xff] %v174_v22  ;;  %v166_v26 = vadd.f32 %v556_v16, %v165_v25  ;;  %708 = vmatprep.mubr.f32.mxu0 %v174_v22 }
 0x133   :  { %v177_v27 = vmax.f32 %v171_v24, 0.0  ;;  %709 = vmatmul.mubr.f32.vlgmr.msra.gmra.mrb[4].mxu0 %v175_v21 }
 0x134   :  { %v176_v28 = vmax.f32 %v166_v26, 0.0 }
 0x135   :  { %185 = vst [vmem:[#allocation2 + $0x21] sm:$0xff] %v177_v27 }
 0x136   :  { %184 = vst [vmem:[#allocation2 + $0x19] sm:$0xff] %v176_v28  ;;  %711 = vmatprep.mubr.f32.mxu0 %v176_v28 }
 0x137   :  { %712 = vmatmul.mubr.f32.gmra.mrb[6].mxu0 %v177_v27 }
 0x138   :  { %v398_v55 = vld [vmem:[#allocation2 + $0xa] sm:$0xff] }
 0x139   :  { %v186_v31 = vld [vmem:[#allocation2] sm:$0xff]  ;;  %v187_v32 = vld [vmem:[#allocation2 + $0x8] sm:$0xff] }
 0x13a   :  { %746 = vmatprep.mubr.f32.mxu1 %v186_v31  ;;  %v397_v41 = vld [vmem:[#allocation2 + $0x2] sm:$0xff] }
 0x13b   :  { %747 = vmatmul.mubr.f32.vlgmr.msra.gmra.mrb[0].mxu1 %v187_v32 }
 0x13c   :  { %889 = vmatpush3.bf16.msra.mxu1 %v886_v15  ;;  %v400_v57 = vld [vmem:[#allocation2 + $0x22] sm:$0xff] }
 0x13d   :  { %v188_v36 = vld [vmem:[#allocation2 + $0x18] sm:$0xff]  ;;  %891 = vmatprep.subr.bf16.mxu1 %v890_v33  ;;  %v189_v37 = vld [vmem:[#allocation2 + $0x20] sm:$0xff] }
 0x13e   :  { %749 = vmatprep.mubr.f32.mxu1 %v188_v36  ;;  %v399_v56 = vld [vmem:[#allocation2 + $0x1a] sm:$0xff] }
 0x13f   :  { %750 = vmatmul.mubr.f32.gmra.mrb[2].mxu1 %v189_v37 }
 0x140   :  { %893 = vmatpush3.bf16.msra.mxu1 %v890_v33  ;;  %784 = vmatprep.mubr.f32.mxu1 %v397_v41 }
 0x141   :  { %895 = vmatprep.subr.bf16.mxu1 %v894_v38 }
 0x144   :  { %897 = vmatpush3.bf16.msra.mxu1 %v894_v38 }
 0x145   :  { %899 = vmatprep.subr.bf16.mxu1 %v898_v42 }
 0x148   :  { %901 = vmatpush3.bf16.msra.mxu1 %v898_v42 }
 0x149   :  { %903 = vmatprep.subr.bf16.mxu1 %v902_v45 }
 0x14c   :  { %905 = vmatpush3.bf16.msra.mxu1 %v902_v45 }
 0x14d   :  { %907 = vmatprep.subr.bf16.mxu1 %v906_v48 }
 0x150   :  { %909 = vmatpush3.bf16.msra.mxu1 %v906_v48 }
 0x151   :  { %911 = vmatprep.subr.bf16.mxu1 %v910_v51 }
 0x154   :  { %913 = vmatpush3.bf16.msra.mxu1 %v910_v51 }
 0x155   :  { %915 = vmatprep.subr.bf16.mxu1 %v914_v54 }
 0x158   :  { %917 = vmatpush3.bf16.msra.mxu1 %v914_v54 }
 0x15b   :  { %785 = vmatmul.mubr.f32.vlgmr.msra.gmra.mrb[0].mxu1 %v398_v55 }
 0x15c   :  { %787 = vmatprep.mubr.f32.mxu1 %v399_v56 }
 0x15f   :  { %788 = vmatmul.mubr.f32.gmra.mrb[2].mxu1 %v400_v57 }
 0x206   :  { %v710_v58 = vpop.f32.mrb[4].mxu0 }
 0x207   :  { %v293_v59 = vpop.f32.mrb[5].mxu0 }
 0x20a   :  { %v713_v60 = vpop.f32.mrb[6].mxu0 }
 0x20b   :  { %v303_v61 = vpop.f32.mrb[7].mxu0 }
 0x22e   :  { %v786_v62 = vpop.f32.mrb[0].mxu1 }
 0x22f   :  { %v918_v0 = vadd.f32 %v786_v62, %v710_v58  ;;  %v484_v1 = vpop.f32.mrb[1].mxu1 }
 0x230   :  { %v919_v2 = vadd.f32 %v484_v1, %v293_v59 }
 0x231   :  { %v515_v3 = vadd.f32 %v918_v0, %v557_v63 }
 0x232   :  { %v514_v4 = vadd.f32 %v919_v2, %v557_v63  ;;  %v789_v5 = vpop.f32.mrb[2].mxu1 }
 0x233   :  { %v519_v6 = vmax.f32 %v515_v3, 0.0  ;;  %v920_v7 = vadd.f32 %v789_v5, %v713_v60  ;;  %v494_v8 = vpop.f32.mrb[3].mxu1 }
 0x234   :  { %v518_v9 = vmax.f32 %v514_v4, 0.0  ;;  %v921_v10 = vadd.f32 %v494_v8, %v303_v61 }
 0x235   :  { %523 = vst [vmem:[#allocation2 + $0x9] sm:$0xff] %v519_v6  ;;  %v517_v11 = vadd.f32 %v920_v7, %v557_v63 }
 0x236   :  { %522 = vst [vmem:[#allocation2 + $0x1] sm:$0xff] %v518_v9  ;;  %v516_v12 = vadd.f32 %v921_v10, %v557_v63 }
 0x237   :  { %v521_v13 = vmax.f32 %v517_v11, 0.0 }
 0x238   :  { %v520_v14 = vmax.f32 %v516_v12, 0.0 }
 0x239   :  { %525 = vst [vmem:[#allocation2 + $0x21] sm:$0xff] %v521_v13 }
 0x23a   :  { %524 = vst [vmem:[#allocation2 + $0x19] sm:$0xff] %v520_v14 }
 0x23d   :  { %v527_v15 = vld [vmem:[#allocation2 + $0x1] ss:$2 sm:$0xff]  ;;  %v531_v16 = vld [vmem:[#allocation2 + $0x2] ss:$2 sm:$0xff] }
 0x23e   :  { %v534_v17 = vmax.f32 %v527_v15, %v531_v16 }
 0x240   :  { %536 = vst [vmem:[#allocation9] sm:$0xff] %v534_v17 }
 0x241   :  { %v529_v18 = vld [vmem:[#allocation2 + $0x19] ss:$2 sm:$0xff]  ;;  %v533_v19 = vld [vmem:[#allocation2 + $0x1a] ss:$2 sm:$0xff] }
 0x242   :  { %v535_v20 = vmax.f32 %v529_v18, %v533_v19 }
 0x244   :  { %537 = vst [vmem:[#allocation9 + $0x8] sm:$0xff] %v535_v20 }
 0x245   :  { %1010 = shalt.err (!%p1007_p0)
}
 0x246   :  { %s1011_s12 = scalar_lea.hbm %s1142_s5, 256 }
 0x247   :  { %p1012_p1 = scmp.ne.s32.totalorder %s1142_s5, %s1011_s12  ;;  %p1015_p2 = scmp.lt.u32.totalorder %s1011_s12, %s1142_s5 }
 0x249   :  { %p1017_p3 = pnand %p1015_p2, %p1012_p1 }
 0x24b   :  { %1020 = shalt.err (!%p1017_p3)
}
 0x24c   :  { %549 = dma.vmem_to_hbm [thread:$0]  %s544_s8, 256, %s1142_s5, [#allocation5], %s1029_s30, %s1029_s30, %s1030_s6  }
 0x24d   :  { %1025 = dma.done.wait [#allocation5], 256  }
 0x24e   :  { %1026 = vsyncadd [#allocation5], 4294967040 }
 0x24f   :  { %553 = vsyncpa [#allocation4], 1 }
 0x250   :  { %554 = vsyncpa [#allocation7], 1 }
 0x251   :  { %555 = vsyncpa [#allocation5], 1 }

</bundles_post_ra>
